<compile_context>
chip_gen: v6e
topology: v6e:2x2x1
jax: 0.10.0
libtpu: 0.0.40
codegen_flags: <defaults>
</compile_context>

<pallas_src>
import jax
import jax.numpy as jnp
from jax.experimental import pallas as pl
from jax.experimental.pallas import tpu as pltpu


def _round_up(n, m):
    return ((n + m - 1) // m) * m


def mlp_softmax_kernel(x_ref, w1_ref, b1_ref, w2_ref, b2_ref, o_ref):
    # fc1: bf16 MXU matmul with f32 accumulation, bias + tanh in f32.
    h = jnp.dot(x_ref[...], w1_ref[...],
                preferred_element_type=jnp.float32) + b1_ref[...]
    h = jnp.tanh(h)                                          # (TB, H_pad) f32

    # dropout with p == 0 is the identity (inference-equivalent), skip it.
    # TODO(synk): training-mode dropout would need pltpu.prng_seed / prng_random_bits.

    # fc2: re-pack activations to bf16 for the MXU, accumulate in f32.
    logits = jnp.dot(h.astype(jnp.bfloat16), w2_ref[...],
                     preferred_element_type=jnp.float32) + b2_ref[...]

    # Padded class lanes have bias -1e30 -> exp underflows to exactly 0,
    # so the 128-lane softmax equals the 3-class softmax on the real lanes.
    m = jnp.max(logits, axis=-1, keepdims=True)
    e = jnp.exp(logits - m)
    denom = jnp.sum(e, axis=-1, keepdims=True)
    inv = 1.0 / denom                     # exact: rows sum to 1 to f32 rounding
    o_ref[...] = e * inv


def network_nn_forward(x, w1, b1, w2, b2):
    """Pallas forward of Network_nn. x: (B, 4), w1: (4, H), b1: (1, H),
    w2: (H, 3), b2: (1, 3). Returns (B, 3) f32 softmax probabilities."""
    B, K = x.shape
    H = w1.shape[1]
    C = w2.shape[1]

    K_pad = _round_up(K, 8)       # sublane-align the contraction dim
    H_pad = _round_up(H, 128)     # lane-dense hidden dim
    C_pad = _round_up(C, 128)     # lane-dense output -> unmasked stores

    # Batch tiling: single tile for small/medium batches (minimal padding),
    # 512-row tiles for large batches (bounded VMEM, megacore-parallel grid).
    if B <= 1024:
        TB = _round_up(B, 16)
    else:
        TB = 512
    B_pad = _round_up(B, TB)

    f32 = jnp.float32
    x_p = jnp.pad(x.astype(f32), ((0, B_pad - B), (0, K_pad - K))
                  ).astype(jnp.bfloat16)
    w1_p = jnp.pad(w1.astype(f32), ((0, K_pad - K), (0, H_pad - H))
                   ).astype(jnp.bfloat16)
    b1_p = jnp.pad(b1.astype(f32), ((0, 0), (0, H_pad - H)))
    w2_p = jnp.pad(w2.astype(f32), ((0, H_pad - H), (0, C_pad - C))
                   ).astype(jnp.bfloat16)
    b2_p = jnp.pad(b2.astype(f32), ((0, 0), (0, C_pad - C)),
                   constant_values=-1e30)

    out_padded = pl.pallas_call(
        mlp_softmax_kernel,
        out_shape=jax.ShapeDtypeStruct((B_pad, C_pad), jnp.float32),
        grid=(B_pad // TB,),
        in_specs=[
            pl.BlockSpec((TB, K_pad), lambda i: (i, 0)),      # x tile
            pl.BlockSpec((K_pad, H_pad), lambda i: (0, 0)),   # w1 (resident)
            pl.BlockSpec((1, H_pad), lambda i: (0, 0)),       # b1 (resident)
            pl.BlockSpec((H_pad, C_pad), lambda i: (0, 0)),   # w2 (resident)
            pl.BlockSpec((1, C_pad), lambda i: (0, 0)),       # b2 (resident)
        ],
        out_specs=pl.BlockSpec((TB, C_pad), lambda i: (i, 0)),
        compiler_params=pltpu.CompilerParams(
            dimension_semantics=("parallel",)),
    )(x_p, w1_p, b1_p, w2_p, b2_p)

    return out_padded[:B, :C]


def reference_forward(x, w1, b1, w2, b2):
    """Pure-JAX reference with the same bf16-matmul / f32-accumulate math."""
    h = jnp.tanh(jnp.dot(x.astype(jnp.bfloat16), w1.astype(jnp.bfloat16),
                         preferred_element_type=jnp.float32) + b1)
    logits = jnp.dot(h.astype(jnp.bfloat16), w2.astype(jnp.bfloat16),
                     preferred_element_type=jnp.float32) + b2
    return jax.nn.softmax(logits, axis=1)


def init_params(key, in_dim, hidden_units, out_dim):
    """Deterministic init matching nn.Linear's U(-1/sqrt(fan_in), 1/sqrt(fan_in))."""
    k1, k2, k3, k4 = jax.random.split(key, 4)
    bound1 = 1.0 / jnp.sqrt(in_dim)
    bound2 = 1.0 / jnp.sqrt(hidden_units)
    w1 = jax.random.uniform(k1, (in_dim, hidden_units), jnp.float32, -bound1, bound1)
    b1 = jax.random.uniform(k2, (1, hidden_units), jnp.float32, -bound1, bound1)
    w2 = jax.random.uniform(k3, (hidden_units, out_dim), jnp.float32, -bound2, bound2)
    b2 = jax.random.uniform(k4, (1, out_dim), jnp.float32, -bound2, bound2)
    return w1, b1, w2, b2


if __name__ == "__main__":
    key = jax.random.PRNGKey(0)
    kx, kx2, kp = jax.random.split(key, 3)

    in_dim = 4        # iris features (fc1 input)
    hidden_units = 32
    out_dim = 3       # iris classes (fc2 output)
    w1, b1, w2, b2 = init_params(kp, in_dim, hidden_units, out_dim)

    # Small iris-style batch (single grid step).
    batch = 8
    x = jax.random.normal(kx, (batch, in_dim), dtype=jnp.float32)
    out = network_nn_forward(x, w1, b1, w2, b2)
    jax.block_until_ready(out)
    ref = reference_forward(x, w1, b1, w2, b2)
    assert out.shape == (batch, out_dim)
    assert jnp.allclose(out, ref, atol=2e-3, rtol=1e-3)
    assert jnp.allclose(jnp.sum(out, axis=1), 1.0, atol=2e-3)

    # Larger, non-multiple-of-16 batch: exercises the padding path.
    batch2 = 600
    x2 = jax.random.normal(kx2, (batch2, in_dim), dtype=jnp.float32)
    out2 = network_nn_forward(x2, w1, b1, w2, b2)
    jax.block_until_ready(out2)
    ref2 = reference_forward(x2, w1, b1, w2, b2)
    assert out2.shape == (batch2, out_dim)
    assert jnp.allclose(out2, ref2, atol=2e-3, rtol=1e-3)
    assert jnp.allclose(jnp.sum(out2, axis=1), 1.0, atol=2e-3)

    print("KERNEL_OK")
</pallas_src>

<mosaic_0001>
module attributes {stable_mosaic.version = 11 : i64} {
  func.func @mlp_softmax_kernel(%arg0: i32, %arg1: memref<16x8xbf16, #tpu.memory_space<vmem>>, %arg2: memref<8x128xbf16, #tpu.memory_space<vmem>>, %arg3: memref<1x128xf32, #tpu.memory_space<vmem>>, %arg4: memref<128x128xbf16, #tpu.memory_space<vmem>>, %arg5: memref<1x128xf32, #tpu.memory_space<vmem>>, %arg6: memref<16x128xf32, #tpu.memory_space<vmem>>) attributes {dimension_semantics = [#tpu.dimension_semantics<parallel>], iteration_bounds = array<i64: 1>, scalar_prefetch = 0 : i64, scratch_operands = 0 : i64, tpu.core_type = #tpu.core_type<tc>, window_params = [{transform_indices = @transform_0, window_bounds = array<i64: 16, 8>}, {pipeline_mode = #tpu.pipeline_mode<synchronous>, transform_indices = @transform_1, window_bounds = array<i64: 8, 128>}, {pipeline_mode = #tpu.pipeline_mode<synchronous>, transform_indices = @transform_2, window_bounds = array<i64: 1, 128>}, {pipeline_mode = #tpu.pipeline_mode<synchronous>, transform_indices = @transform_3, window_bounds = array<i64: 128, 128>}, {pipeline_mode = #tpu.pipeline_mode<synchronous>, transform_indices = @transform_4, window_bounds = array<i64: 1, 128>}, {transform_indices = @transform_5, window_bounds = array<i64: 16, 128>}]} {
    %c0 = arith.constant 0 : index
    %c0_0 = arith.constant 0 : index
    %0 = vector.load %arg1[%c0, %c0_0] : memref<16x8xbf16, #tpu.memory_space<vmem>>, vector<16x8xbf16>
    %c0_1 = arith.constant 0 : index
    %c0_2 = arith.constant 0 : index
    %1 = vector.load %arg2[%c0_1, %c0_2] : memref<8x128xbf16, #tpu.memory_space<vmem>>, vector<8x128xbf16>
    %cst = arith.constant dense<0.000000e+00> : vector<16x128xf32>
    %2 = tpu.matmul %0, %1, %cst {dimension_numbers = #tpu.dot_dimension_numbers<[1], [0], [0], [1], [0, 0, 1, 1], [], []>} : vector<16x8xbf16>, vector<8x128xbf16>, vector<16x128xf32> -> vector<16x128xf32>
    %c0_3 = arith.constant 0 : index
    %c0_4 = arith.constant 0 : index
    %3 = vector.load %arg3[%c0_3, %c0_4] : memref<1x128xf32, #tpu.memory_space<vmem>>, vector<1x128xf32>
    %4 = vector.broadcast %3 : vector<1x128xf32> to vector<16x128xf32>
    %5 = arith.addf %2, %4 : vector<16x128xf32>
    %6 = math.tanh %5 : vector<16x128xf32>
    %7 = arith.truncf %6 : vector<16x128xf32> to vector<16x128xbf16>
    %c0_5 = arith.constant 0 : index
    %c0_6 = arith.constant 0 : index
    %8 = vector.load %arg4[%c0_5, %c0_6] : memref<128x128xbf16, #tpu.memory_space<vmem>>, vector<128x128xbf16>
    %cst_7 = arith.constant dense<0.000000e+00> : vector<16x128xf32>
    %9 = tpu.matmul %7, %8, %cst_7 {dimension_numbers = #tpu.dot_dimension_numbers<[1], [0], [0], [1], [0, 0, 1, 1], [], []>} : vector<16x128xbf16>, vector<128x128xbf16>, vector<16x128xf32> -> vector<16x128xf32>
    %c0_8 = arith.constant 0 : index
    %c0_9 = arith.constant 0 : index
    %10 = vector.load %arg5[%c0_8, %c0_9] : memref<1x128xf32, #tpu.memory_space<vmem>>, vector<1x128xf32>
    %11 = vector.broadcast %10 : vector<1x128xf32> to vector<16x128xf32>
    %12 = arith.addf %9, %11 : vector<16x128xf32>
    %cst_10 = arith.constant dense<0xFF800000> : vector<16xf32>
    %13 = vector.multi_reduction <maximumf>, %12, %cst_10 [1] : vector<16x128xf32> to vector<16xf32>
    %14 = vector.shape_cast %13 : vector<16xf32> to vector<16x1xf32>
    %15 = vector.broadcast %14 : vector<16x1xf32> to vector<16x128xf32>
    %16 = arith.subf %12, %15 : vector<16x128xf32>
    %17 = math.exp %16 : vector<16x128xf32>
    %cst_11 = arith.constant dense<0.000000e+00> : vector<16xf32>
    %18 = vector.multi_reduction <add>, %17, %cst_11 [1] : vector<16x128xf32> to vector<16xf32>
    %19 = vector.shape_cast %18 : vector<16xf32> to vector<16x1xf32>
    %cst_12 = arith.constant 1.000000e+00 : f32
    %20 = vector.broadcast %cst_12 : f32 to vector<16x1xf32>
    %21 = arith.divf %20, %19 : vector<16x1xf32>
    %22 = vector.broadcast %21 : vector<16x1xf32> to vector<16x128xf32>
    %23 = arith.mulf %17, %22 : vector<16x128xf32>
    %c0_13 = arith.constant 0 : index
    %c0_14 = arith.constant 0 : index
    %24 = vector.load %arg6[%c0_13, %c0_14] : memref<16x128xf32, #tpu.memory_space<vmem>>, vector<16x128xf32>
    tpu.vector_store %arg6[%c0_13, %c0_14], %23 {strides = array<i32>} : memref<16x128xf32, #tpu.memory_space<vmem>>, vector<16x128xf32>,
    return
  }
  func.func @transform_0(%arg0: i32) -> (i32, i32) {
    %c0_i32 = arith.constant 0 : i32
    %c0_i32_0 = arith.constant 0 : i32
    return %arg0, %c0_i32 : i32, i32
  }
  func.func @transform_1(%arg0: i32) -> (i32, i32) {
    %c0_i32 = arith.constant 0 : i32
    %c0_i32_0 = arith.constant 0 : i32
    %c0_i32_1 = arith.constant 0 : i32
    return %c0_i32, %c0_i32_0 : i32, i32
  }
  func.func @transform_2(%arg0: i32) -> (i32, i32) {
    %c0_i32 = arith.constant 0 : i32
    %c0_i32_0 = arith.constant 0 : i32
    %c0_i32_1 = arith.constant 0 : i32
    return %c0_i32, %c0_i32_0 : i32, i32
  }
  func.func @transform_3(%arg0: i32) -> (i32, i32) {
    %c0_i32 = arith.constant 0 : i32
    %c0_i32_0 = arith.constant 0 : i32
    %c0_i32_1 = arith.constant 0 : i32
    return %c0_i32, %c0_i32_0 : i32, i32
  }
  func.func @transform_4(%arg0: i32) -> (i32, i32) {
    %c0_i32 = arith.constant 0 : i32
    %c0_i32_0 = arith.constant 0 : i32
    %c0_i32_1 = arith.constant 0 : i32
    return %c0_i32, %c0_i32_0 : i32, i32
  }
  func.func @transform_5(%arg0: i32) -> (i32, i32) {
    %c0_i32 = arith.constant 0 : i32
    %c0_i32_0 = arith.constant 0 : i32
    return %arg0, %c0_i32 : i32, i32
  }
}

</mosaic_0001>

<bundles_post_ra>
// kernel: tpu_custom_call.1
= control target key start
LH: loop header
LB: loop body
LE: loop exit
PB: predicated region body
PF: predicated region fallthrough
CT: control target
= control target key end

     0   :  { %10 = vsyncpa [#allocation3], 0  ;;  %s432_s0 = inlined_call_operand.vmem [shape: bf16[16,8], index: 0, kind: input, shape index: {}]   ;;  %s433_s1 = inlined_call_operand.vmem [shape: bf16[8,128], index: 1, kind: input, shape index: {}]   ;;  %s434_s2 = inlined_call_operand.vmem [shape: f32[1,128], index: 2, kind: input, shape index: {}]   ;;  %s435_s3 = inlined_call_operand.hbm [shape: bf16[128,128], index: 3, kind: input, shape index: {}]   ;;  %s436_s4 = inlined_call_operand.vmem [shape: f32[1,128], index: 4, kind: input, shape index: {}]   ;;  %s437_s5 = inlined_call_operand.hbm [shape: f32[16,128], index: 5, kind: output, shape index: {}]  }
   0x1   :  { %11 = vsyncpa [#allocation4], 0  ;;  %s376_s18 = smov [#allocation2]  }
   0x2   :  { %s23_s19 = sshll.u32 %s376_s18, 4  ;;  %s24_s19 = int_to_ptr.vmem [resolvable:$true] %s23_s19 }
   0x3   :  { %s340_s20 = scalar_lea.vmem %s24_s19, 1024  ;;  %p345_p1 = scmp.lt.s32.totalorder %s24_s19, %s24_s19 }
   0x4   :  { %p341_p0 = scmp.ne.s32.totalorder %s24_s19, %s340_s20  ;;  %p346_p2 = scmp.lt.s32.totalorder %s340_s20, %s340_s20 }
   0x6   :  { %p347_p3 = por %p346_p2, %p345_p1 }
   0x8   :  { %p348_p4 = pnand %p347_p3, %p341_p0 }
   0xa   :  { %351 = shalt.err (!%p348_p4)
}
   0xb   :  { %s377_s21 = smov 64   ;;  %s378_s22 = smov 4  }
   0xc   :  { %29 = dma.hbm_to_vmem [thread:$0]  %s435_s3, 1024, %s24_s19, [#allocation3], %s377_s21, %s377_s21, %s378_s22  }
   0xd   :  { %372 = dma.done.wait [#allocation3], 1024  }
   0xe   :  { %373 = vsyncadd [#allocation3], 4294966272  ;;  %v379_v0 = vmov 0.0   ;;  %vm380_vm0 = vmmov 0   ;;  %vm55_vm1 = vcmask 1043456   ;;  %v311_v3 = vld [vmem:[%s432_s0] sm:$0xff]  }
   0xf   :  { %277 = vmatprep.subr.bf16.mxu0 %v379_v0  ;;  %279 = vmatprep.mubr.msk.bf16.mxu0 %vm380_vm0, %v379_v0  ;;  %v38_v1 = vld [vmem:[%s433_s1] sm:$0xf]  ;;  %vm51_vm2 = vcmask 64512   ;;  %v312_v4 = vld [vmem:[#allocation2 + $0x38] sm:$0xff]   ;;  %v313_v5 = vld [vmem:[#allocation2 + $0x30] sm:$0xff]  }
  0x10   :  { %283 = vmatprep.subr.bf16.mxu1 %v379_v0  ;;  %299 = vmatprep.mubr.msk.bf16.mxu1 %vm380_vm0, %v379_v0  ;;  %v57_v2 = vsel %vm55_vm1, %v38_v1, 0  ;;  %v314_v6 = vld [vmem:[#allocation2 + $0x28] sm:$0xff]   ;;  %v315_v7 = vld [vmem:[#allocation2 + $0x20] sm:$0xff]   ;;  %v316_v8 = vld [vmem:[#allocation2 + $0x18] sm:$0xff]  }
  0x11   :  { %278 = vmatpush3.bf16.msra.mxu0 %v57_v2  ;;  %284 = vmatpush3.bf16.msra.mxu1 %v312_v4  ;;  %v317_v9 = vld [vmem:[#allocation2 + $0x10] sm:$0xff]   ;;  %v318_v10 = vld [vmem:[#allocation2 + $0x8] sm:$0xff]   ;;  %v319_v11 = vld [vmem:[#allocation2] sm:$0xff]  }
  0x12   :  { %285 = vmatprep.subr.bf16.mxu1 %v379_v0  ;;  %v254_v12 = vld [vmem:[%s434_s2] ss:$0 sm:$0xff]  ;;  %s381_s2 = smov [#allocation5]  }
  0x13   :  { %v257_v22 = vld [vmem:[%s436_s4] ss:$0 sm:$0xff]  ;;  %s242_s4 = sshll.u32 %s381_s2, 4  ;;  %s243_s4 = int_to_ptr.vmem [resolvable:$true] %s242_s4 }
  0x14   :  { %280 = vmatmul.mubr.msk.bf16.vlgmr.msra.gmra.mxu0 %vm51_vm2, %v311_v3  ;;  %s352_s30 = scalar_lea.vmem %s243_s4, 256  ;;  %p357_p6 = scmp.lt.s32.totalorder %s243_s4, %s243_s4 }
  0x15   :  { %286 = vmatpush3.bf16.msra.mxu1 %v313_v5  ;;  %p353_p5 = scmp.ne.s32.totalorder %s243_s4, %s352_s30  ;;  %p358_p7 = scmp.lt.s32.totalorder %s352_s30, %s352_s30 }
  0x16   :  { %287 = vmatprep.subr.bf16.mxu1 %v379_v0 }
  0x17   :  { %p359_p8 = por %p358_p7, %p357_p6 }
  0x19   :  { %288 = vmatpush3.bf16.msra.mxu1 %v314_v6  ;;  %p360_p9 = pnand %p359_p8, %p353_p5 }
  0x1a   :  { %289 = vmatprep.subr.bf16.mxu1 %v379_v0 }
  0x1d   :  { %290 = vmatpush3.bf16.msra.mxu1 %v315_v7 }
  0x1e   :  { %291 = vmatprep.subr.bf16.mxu1 %v379_v0 }
  0x21   :  { %292 = vmatpush3.bf16.msra.mxu1 %v316_v8 }
  0x22   :  { %293 = vmatprep.subr.bf16.mxu1 %v379_v0 }
  0x25   :  { %294 = vmatpush3.bf16.msra.mxu1 %v317_v9 }
  0x26   :  { %295 = vmatprep.subr.bf16.mxu1 %v379_v0 }
  0x29   :  { %296 = vmatpush3.bf16.msra.mxu1 %v318_v10 }
  0x2a   :  { %297 = vmatprep.subr.bf16.mxu1 %v379_v0 }
  0x2d   :  { %298 = vmatpush3.bf16.msra.mxu1 %v319_v11 }
  0xd4   :  { %v93_v13 = vpop.f32.mrf.mxu0 }
  0xd5   :  { %v94_v14 = vadd.f32 %v254_v12, %v93_v13 }
  0xd6   :  { %v281_v15 = vpop.f32.mrf.mxu0 }
  0xd7   :  { %320 = vtanh.f32 %v94_v14 }
  0xd8   :  { %v96_v16 = vpop.f32.mrf.mxu0 }
  0xd9   :  { %v97_v17 = vadd.f32 %v254_v12, %v96_v16 }
  0xda   :  { %v282_v18 = vpop.f32.mrf.mxu0 }
  0xdb   :  { %322 = vtanh.f32 %v97_v17 }
  0xe4   :  { %v321_v19 = vpop.eup %320 }
  0xe8   :  { %v323_v20 = vpop.eup %322 }
  0xe9   :  { %v102_v21 = vpack.c.bf16 %v323_v20, %v321_v19 }
  0xeb   :  { %300 = vmatmul.mubr.bf16.vlgmr.msra.gmra.mxu1 %v102_v21 }
 0x1ab   :  { %v208_v23 = vpop.f32.mrf.mxu1 }
 0x1ac   :  { %v209_v24 = vadd.f32 %v257_v22, %v208_v23 }
 0x1ad   :  { %v301_v25 = vpop.f32.mrf.mxu1 }
 0x1ae   :  { %215 = vmax.xlane.f32.xlu0 %v209_v24 }
 0x1af   :  { %v211_v26 = vpop.f32.mrf.mxu1 }
 0x1b0   :  { %v212_v27 = vadd.f32 %v257_v22, %v211_v26 }
 0x1b1   :  { %v302_v28 = vpop.f32.mrf.mxu1 }
 0x1b2   :  { %217 = vmax.xlane.f32.xlu0 %v212_v27 }
 0x237   :  { %v216_v29 = vpop.xlane.xlu0 %215 }
 0x238   :  { %v219_v30 = vsub.f32 %v209_v24, %v216_v29 }
 0x23a   :  { %v221_v31 = vmul.f32 1.442695, %v219_v30 }
 0x23b   :  { %v218_v32 = vpop.xlane.xlu0 %217 }
 0x23c   :  { %324 = vpow2.f32 %v221_v31  ;;  %v220_v33 = vsub.f32 %v212_v27, %v218_v32 }
 0x23e   :  { %v223_v34 = vmul.f32 1.442695, %v220_v33 }
 0x240   :  { %326 = vpow2.f32 %v223_v34 }
 0x249   :  { %v325_v35 = vpop.eup %324 }
 0x24a   :  { %225 = vadd.xlane.f32.xlu1 %v325_v35 }
 0x24d   :  { %v327_v36 = vpop.eup %326 }
 0x24e   :  { %227 = vadd.xlane.f32.xlu1 %v327_v36 }
 0x2d3   :  { %v226_v37 = vpop.xlane.xlu1 %225 }
 0x2d4   :  { %328 = vrcp.f32 %v226_v37 }
 0x2d7   :  { %v228_v38 = vpop.xlane.xlu1 %227 }
 0x2d8   :  { %330 = vrcp.f32 %v228_v38 }
 0x2e1   :  { %v329_v39 = vpop.eup %328 }
 0x2e2   :  { %v233_v40 = vmul.f32 %v329_v39, %v325_v35 }
 0x2e4   :  { %235 = vst [vmem:[#allocation5] sm:$0xff] %v233_v40 }
 0x2e5   :  { %v331_v41 = vpop.eup %330 }
 0x2e6   :  { %v234_v42 = vmul.f32 %v331_v41, %v327_v36 }
 0x2e8   :  { %236 = vst [vmem:[#allocation5 + $0x8] sm:$0xff] %v234_v42 }
 0x2e9   :  { %363 = shalt.err (!%p360_p9)
}
 0x2ea   :  { %s382_s6 = smov 128   ;;  %s383_s7 = smov 8  }
 0x2eb   :  { %248 = dma.vmem_to_hbm [thread:$0]  %s243_s4, 256, %s437_s5, [#allocation4], %s382_s6, %s382_s6, %s383_s7  }
 0x2ec   :  { %374 = dma.done.wait [#allocation4], 256  }
 0x2ed   :  { %375 = vsyncadd [#allocation4], 4294967040 }
 0x2ee   :  { %252 = vsyncpa [#allocation3], 1 }
 0x2ef   :  { %253 = vsyncpa [#allocation4], 1 }

</bundles_post_ra>
